<compile_context>
chip_gen: v7x
topology: tpu7x:2x2x1
jax: 0.10.0
libtpu: 0.0.40
codegen_flags: <defaults>
</compile_context>

<pallas_src>
import functools

import jax
import jax.numpy as jnp
from jax.experimental import pallas as pl
from jax.experimental.pallas import tpu as pltpu

NEG_SLOPE = 0.01        # F.leaky_relu default
HIDDEN = 30
HIDDEN_PAD = 32         # 30 -> 32: clean sublane packing for the hidden chain
LANE = 128              # lane width; output padded to a multiple of this


def _leaky_relu(x):
    return jnp.where(x > 0, x, NEG_SLOPE * x)


def _round_up(n, m):
    return (n + m - 1) // m * m


def cdenet_kernel(x_ref, w1_ref, b1_ref, w2_ref, b2_ref,
                  w3_ref, b3_ref, wc_ref, bc_ref, out_ref):
    x = x_ref[...]

    h = jnp.dot(x, w1_ref[...], preferred_element_type=jnp.float32) + b1_ref[...]
    h = _leaky_relu(h)

    h = jnp.dot(h, w2_ref[...], preferred_element_type=jnp.float32) + b2_ref[...]
    h = _leaky_relu(h)

    # TODO(synk): nn.Dropout(0.3) is identity in eval mode; training-mode
    # stochastic masking (pltpu.prng_seed / prng_random_bits) not applied here.

    h = jnp.dot(h, w3_ref[...], preferred_element_type=jnp.float32) + b3_ref[...]
    h = _leaky_relu(h)

    beta = jnp.dot(h, wc_ref[...], preferred_element_type=jnp.float32) + bc_ref[...]
    out_ref[...] = beta.astype(out_ref.dtype)


def cdenet_forward(x, params, *, block_b=512):
    """x: [B, n_cov] float32. params: PyTorch-shaped weights (see init_params)."""
    B, n_cov = x.shape
    basis_size = params["wc"].shape[1]

    hp = HIDDEN_PAD - HIDDEN
    bs_pad = _round_up(basis_size, LANE)

    # Zero-pad hidden 30->32 and basis_size -> multiple of 128 (lane-dense out).
    # Zero rows/cols + zero bias pads are exact numerical no-ops.
    w1 = jnp.pad(params["w1"], ((0, 0), (0, hp)))
    b1 = jnp.pad(params["b1"], ((0, 0), (0, hp)))
    w2 = jnp.pad(params["w2"], ((0, hp), (0, hp)))
    b2 = jnp.pad(params["b2"], ((0, 0), (0, hp)))
    w3 = jnp.pad(params["w3"], ((0, hp), (0, hp)))
    b3 = jnp.pad(params["b3"], ((0, 0), (0, hp)))
    wc = jnp.pad(params["wc"], ((0, hp), (0, bs_pad - basis_size)))
    bc = jnp.pad(params["bc"], ((0, 0), (0, bs_pad - basis_size)))

    # Batch tiling: tile is a multiple of 8 sublanes, batch padded to a tile
    # multiple so the 1-D grid divides evenly.
    tile_b = min(block_b, _round_up(B, 8))
    tile_b = _round_up(tile_b, 8)
    b_pad = _round_up(B, tile_b)
    x_p = jnp.pad(x, ((0, b_pad - B), (0, 0))) if b_pad != B else x

    grid = (b_pad // tile_b,)

    def resident_spec(shape):
        # Weight/bias tile is the whole array and never moves across grid steps.
        return pl.BlockSpec(shape, lambda i: (0, 0))

    in_specs = [
        pl.BlockSpec((tile_b, n_cov), lambda i: (i, 0)),   # x: pipelined over batch
        resident_spec(w1.shape), resident_spec(b1.shape),
        resident_spec(w2.shape), resident_spec(b2.shape),
        resident_spec(w3.shape), resident_spec(b3.shape),
        resident_spec(wc.shape), resident_spec(bc.shape),
    ]
    out_specs = pl.BlockSpec((tile_b, bs_pad), lambda i: (i, 0))

    out_padded = pl.pallas_call(
        cdenet_kernel,
        out_shape=jax.ShapeDtypeStruct((b_pad, bs_pad), jnp.float32),
        grid_spec=pltpu.PrefetchScalarGridSpec(
            num_scalar_prefetch=0,
            grid=grid,
            in_specs=in_specs,
            out_specs=out_specs,
        ),
        compiler_params=pltpu.CompilerParams(
            dimension_semantics=("parallel",),   # shards batch tiles across v7x TCs
        ),
    )(x_p, w1, b1, w2, b2, w3, b3, wc, bc)

    return out_padded[:B, :basis_size]


def init_params(key, n_cov, basis_size, hidden=HIDDEN):
    """Deterministic synthetic parameters (PyTorch-style uniform fan-in init)."""
    def linear(k, fan_in, fan_out):
        k_w, k_b = jax.random.split(k)
        bound = 1.0 / jnp.sqrt(fan_in)
        w = jax.random.uniform(k_w, (fan_in, fan_out), jnp.float32, -bound, bound)
        b = jax.random.uniform(k_b, (1, fan_out), jnp.float32, -bound, bound)
        return w, b

    k1, k2, k3, k4 = jax.random.split(key, 4)
    w1, b1 = linear(k1, n_cov, hidden)
    w2, b2 = linear(k2, hidden, hidden)
    w3, b3 = linear(k3, hidden, hidden)
    wc, bc = linear(k4, hidden, basis_size)
    return dict(w1=w1, b1=b1, w2=w2, b2=b2, w3=w3, b3=b3, wc=wc, bc=bc)


def reference_forward(x, p):
    """Pure-JAX reference for correctness check (eval-mode dropout = identity)."""
    h = _leaky_relu(x @ p["w1"] + p["b1"])
    h = _leaky_relu(h @ p["w2"] + p["b2"])
    h = _leaky_relu(h @ p["w3"] + p["b3"])
    return h @ p["wc"] + p["bc"]


if __name__ == "__main__":
    key = jax.random.PRNGKey(0)
    k_x, k_x2, k_p = jax.random.split(key, 3)

    n_cov, basis_size = 9, 31
    params = init_params(k_p, n_cov=n_cov, basis_size=basis_size)

    fwd = jax.jit(functools.partial(cdenet_forward, block_b=512))
    ref_fn = jax.jit(reference_forward)

    # Case 1: tiny batch, single grid step.
    B1 = 8
    x1 = jax.random.normal(k_x, (B1, n_cov), jnp.float32)
    beta1 = jax.block_until_ready(fwd(x1, params))
    ref1 = ref_fn(x1, params)
    assert beta1.shape == (B1, basis_size)
    assert jnp.allclose(beta1, ref1, atol=1e-5, rtol=1e-5), "mismatch (B=8)"

    # Case 2: non-multiple batch + small tile to exercise the pipelined batch
    # grid (padding + multi-step grid + parallel semantics).
    B2 = 40
    x2 = jax.random.normal(k_x2, (B2, n_cov), jnp.float32)
    fwd_small_tile = jax.jit(functools.partial(cdenet_forward, block_b=16))
    beta2 = jax.block_until_ready(fwd_small_tile(x2, params))
    ref2 = ref_fn(x2, params)
    assert beta2.shape == (B2, basis_size)
    assert jnp.allclose(beta2, ref2, atol=1e-5, rtol=1e-5), "mismatch (B=40)"

    print("KERNEL_OK")
</pallas_src>

<mosaic_0001>
module attributes {stable_mosaic.version = 11 : i64} {
  func.func @cdenet_kernel(%arg0: i32, %arg1: memref<8x9xf32, #tpu.memory_space<vmem>>, %arg2: memref<9x32xf32, #tpu.memory_space<vmem>>, %arg3: memref<1x32xf32, #tpu.memory_space<vmem>>, %arg4: memref<32x32xf32, #tpu.memory_space<vmem>>, %arg5: memref<1x32xf32, #tpu.memory_space<vmem>>, %arg6: memref<32x32xf32, #tpu.memory_space<vmem>>, %arg7: memref<1x32xf32, #tpu.memory_space<vmem>>, %arg8: memref<32x128xf32, #tpu.memory_space<vmem>>, %arg9: memref<1x128xf32, #tpu.memory_space<vmem>>, %arg10: memref<8x128xf32, #tpu.memory_space<vmem>>) attributes {dimension_semantics = [#tpu.dimension_semantics<parallel>], iteration_bounds = array<i64: 1>, scalar_prefetch = 0 : i64, scratch_operands = 0 : i64, tpu.core_type = #tpu.core_type<tc>, window_params = [{transform_indices = @transform_0, window_bounds = array<i64: 8, 9>}, {pipeline_mode = #tpu.pipeline_mode<synchronous>, transform_indices = @transform_1, window_bounds = array<i64: 9, 32>}, {pipeline_mode = #tpu.pipeline_mode<synchronous>, transform_indices = @transform_2, window_bounds = array<i64: 1, 32>}, {pipeline_mode = #tpu.pipeline_mode<synchronous>, transform_indices = @transform_3, window_bounds = array<i64: 32, 32>}, {pipeline_mode = #tpu.pipeline_mode<synchronous>, transform_indices = @transform_4, window_bounds = array<i64: 1, 32>}, {pipeline_mode = #tpu.pipeline_mode<synchronous>, transform_indices = @transform_5, window_bounds = array<i64: 32, 32>}, {pipeline_mode = #tpu.pipeline_mode<synchronous>, transform_indices = @transform_6, window_bounds = array<i64: 1, 32>}, {pipeline_mode = #tpu.pipeline_mode<synchronous>, transform_indices = @transform_7, window_bounds = array<i64: 32, 128>}, {pipeline_mode = #tpu.pipeline_mode<synchronous>, transform_indices = @transform_8, window_bounds = array<i64: 1, 128>}, {transform_indices = @transform_9, window_bounds = array<i64: 8, 128>}]} {
    %c0 = arith.constant 0 : index
    %c0_0 = arith.constant 0 : index
    %0 = vector.load %arg1[%c0, %c0_0] : memref<8x9xf32, #tpu.memory_space<vmem>>, vector<8x9xf32>
    %c0_1 = arith.constant 0 : index
    %c0_2 = arith.constant 0 : index
    %1 = vector.load %arg2[%c0_1, %c0_2] : memref<9x32xf32, #tpu.memory_space<vmem>>, vector<9x32xf32>
    %cst = arith.constant dense<0.000000e+00> : vector<8x32xf32>
    %2 = tpu.matmul %0, %1, %cst {dimension_numbers = #tpu.dot_dimension_numbers<[1], [0], [0], [1], [0, 0, 1, 1], [], []>} : vector<8x9xf32>, vector<9x32xf32>, vector<8x32xf32> -> vector<8x32xf32>
    %c0_3 = arith.constant 0 : index
    %c0_4 = arith.constant 0 : index
    %3 = vector.load %arg3[%c0_3, %c0_4] : memref<1x32xf32, #tpu.memory_space<vmem>>, vector<1x32xf32>
    %4 = vector.broadcast %3 : vector<1x32xf32> to vector<8x32xf32>
    %5 = arith.addf %2, %4 : vector<8x32xf32>
    %cst_5 = arith.constant 0.000000e+00 : f32
    %6 = vector.broadcast %cst_5 : f32 to vector<8x32xf32>
    %7 = arith.cmpf ogt, %5, %6 : vector<8x32xf32>
    %cst_6 = arith.constant 0.00999999977 : f32
    %8 = vector.broadcast %cst_6 : f32 to vector<8x32xf32>
    %9 = arith.mulf %8, %5 : vector<8x32xf32>
    %10 = arith.select %7, %5, %9 : vector<8x32xi1>, vector<8x32xf32>
    %c0_7 = arith.constant 0 : index
    %c0_8 = arith.constant 0 : index
    %11 = vector.load %arg4[%c0_7, %c0_8] : memref<32x32xf32, #tpu.memory_space<vmem>>, vector<32x32xf32>
    %cst_9 = arith.constant dense<0.000000e+00> : vector<8x32xf32>
    %12 = tpu.matmul %10, %11, %cst_9 {dimension_numbers = #tpu.dot_dimension_numbers<[1], [0], [0], [1], [0, 0, 1, 1], [], []>} : vector<8x32xf32>, vector<32x32xf32>, vector<8x32xf32> -> vector<8x32xf32>
    %c0_10 = arith.constant 0 : index
    %c0_11 = arith.constant 0 : index
    %13 = vector.load %arg5[%c0_10, %c0_11] : memref<1x32xf32, #tpu.memory_space<vmem>>, vector<1x32xf32>
    %14 = vector.broadcast %13 : vector<1x32xf32> to vector<8x32xf32>
    %15 = arith.addf %12, %14 : vector<8x32xf32>
    %cst_12 = arith.constant 0.000000e+00 : f32
    %16 = vector.broadcast %cst_12 : f32 to vector<8x32xf32>
    %17 = arith.cmpf ogt, %15, %16 : vector<8x32xf32>
    %cst_13 = arith.constant 0.00999999977 : f32
    %18 = vector.broadcast %cst_13 : f32 to vector<8x32xf32>
    %19 = arith.mulf %18, %15 : vector<8x32xf32>
    %20 = arith.select %17, %15, %19 : vector<8x32xi1>, vector<8x32xf32>
    %c0_14 = arith.constant 0 : index
    %c0_15 = arith.constant 0 : index
    %21 = vector.load %arg6[%c0_14, %c0_15] : memref<32x32xf32, #tpu.memory_space<vmem>>, vector<32x32xf32>
    %cst_16 = arith.constant dense<0.000000e+00> : vector<8x32xf32>
    %22 = tpu.matmul %20, %21, %cst_16 {dimension_numbers = #tpu.dot_dimension_numbers<[1], [0], [0], [1], [0, 0, 1, 1], [], []>} : vector<8x32xf32>, vector<32x32xf32>, vector<8x32xf32> -> vector<8x32xf32>
    %c0_17 = arith.constant 0 : index
    %c0_18 = arith.constant 0 : index
    %23 = vector.load %arg7[%c0_17, %c0_18] : memref<1x32xf32, #tpu.memory_space<vmem>>, vector<1x32xf32>
    %24 = vector.broadcast %23 : vector<1x32xf32> to vector<8x32xf32>
    %25 = arith.addf %22, %24 : vector<8x32xf32>
    %cst_19 = arith.constant 0.000000e+00 : f32
    %26 = vector.broadcast %cst_19 : f32 to vector<8x32xf32>
    %27 = arith.cmpf ogt, %25, %26 : vector<8x32xf32>
    %cst_20 = arith.constant 0.00999999977 : f32
    %28 = vector.broadcast %cst_20 : f32 to vector<8x32xf32>
    %29 = arith.mulf %28, %25 : vector<8x32xf32>
    %30 = arith.select %27, %25, %29 : vector<8x32xi1>, vector<8x32xf32>
    %c0_21 = arith.constant 0 : index
    %c0_22 = arith.constant 0 : index
    %31 = vector.load %arg8[%c0_21, %c0_22] : memref<32x128xf32, #tpu.memory_space<vmem>>, vector<32x128xf32>
    %cst_23 = arith.constant dense<0.000000e+00> : vector<8x128xf32>
    %32 = tpu.matmul %30, %31, %cst_23 {dimension_numbers = #tpu.dot_dimension_numbers<[1], [0], [0], [1], [0, 0, 1, 1], [], []>} : vector<8x32xf32>, vector<32x128xf32>, vector<8x128xf32> -> vector<8x128xf32>
    %c0_24 = arith.constant 0 : index
    %c0_25 = arith.constant 0 : index
    %33 = vector.load %arg9[%c0_24, %c0_25] : memref<1x128xf32, #tpu.memory_space<vmem>>, vector<1x128xf32>
    %34 = vector.broadcast %33 : vector<1x128xf32> to vector<8x128xf32>
    %35 = arith.addf %32, %34 : vector<8x128xf32>
    %c0_26 = arith.constant 0 : index
    %c0_27 = arith.constant 0 : index
    %36 = vector.load %arg10[%c0_26, %c0_27] : memref<8x128xf32, #tpu.memory_space<vmem>>, vector<8x128xf32>
    tpu.vector_store %arg10[%c0_26, %c0_27], %35 {strides = array<i32>} : memref<8x128xf32, #tpu.memory_space<vmem>>, vector<8x128xf32>,
    return
  }
  func.func @transform_0(%arg0: i32) -> (i32, i32) {
    %c0_i32 = arith.constant 0 : i32
    %c0_i32_0 = arith.constant 0 : i32
    return %arg0, %c0_i32 : i32, i32
  }
  func.func @transform_1(%arg0: i32) -> (i32, i32) {
    %c0_i32 = arith.constant 0 : i32
    %c0_i32_0 = arith.constant 0 : i32
    %c0_i32_1 = arith.constant 0 : i32
    return %c0_i32, %c0_i32_0 : i32, i32
  }
  func.func @transform_2(%arg0: i32) -> (i32, i32) {
    %c0_i32 = arith.constant 0 : i32
    %c0_i32_0 = arith.constant 0 : i32
    %c0_i32_1 = arith.constant 0 : i32
    return %c0_i32, %c0_i32_0 : i32, i32
  }
  func.func @transform_3(%arg0: i32) -> (i32, i32) {
    %c0_i32 = arith.constant 0 : i32
    %c0_i32_0 = arith.constant 0 : i32
    %c0_i32_1 = arith.constant 0 : i32
    return %c0_i32, %c0_i32_0 : i32, i32
  }
  func.func @transform_4(%arg0: i32) -> (i32, i32) {
    %c0_i32 = arith.constant 0 : i32
    %c0_i32_0 = arith.constant 0 : i32
    %c0_i32_1 = arith.constant 0 : i32
    return %c0_i32, %c0_i32_0 : i32, i32
  }
  func.func @transform_5(%arg0: i32) -> (i32, i32) {
    %c0_i32 = arith.constant 0 : i32
    %c0_i32_0 = arith.constant 0 : i32
    %c0_i32_1 = arith.constant 0 : i32
    return %c0_i32, %c0_i32_0 : i32, i32
  }
  func.func @transform_6(%arg0: i32) -> (i32, i32) {
    %c0_i32 = arith.constant 0 : i32
    %c0_i32_0 = arith.constant 0 : i32
    %c0_i32_1 = arith.constant 0 : i32
    return %c0_i32, %c0_i32_0 : i32, i32
  }
  func.func @transform_7(%arg0: i32) -> (i32, i32) {
    %c0_i32 = arith.constant 0 : i32
    %c0_i32_0 = arith.constant 0 : i32
    %c0_i32_1 = arith.constant 0 : i32
    return %c0_i32, %c0_i32_0 : i32, i32
  }
  func.func @transform_8(%arg0: i32) -> (i32, i32) {
    %c0_i32 = arith.constant 0 : i32
    %c0_i32_0 = arith.constant 0 : i32
    %c0_i32_1 = arith.constant 0 : i32
    return %c0_i32, %c0_i32_0 : i32, i32
  }
  func.func @transform_9(%arg0: i32) -> (i32, i32) {
    %c0_i32 = arith.constant 0 : i32
    %c0_i32_0 = arith.constant 0 : i32
    return %arg0, %c0_i32 : i32, i32
  }
}

</mosaic_0001>

<bundles_post_ra>
// kernel: cdenet_forward.1
= control target key start
LH: loop header
LB: loop body
LE: loop exit
PB: predicated region body
PF: predicated region fallthrough
CT: control target
= control target key end

     0   :  { %vm47_vm0 = vcmask 1040384   ;;  %v516_v2 = vmov 0.0|0.0   ;;  %vm517_vm1 = vmmov 1   ;;  %vm518_vm3 = vmmov 0   ;;  %s647_s0 = inlined_call_operand.vmem [shape: f32[8,9], index: 0, kind: input, shape index: {}]   ;;  %s648_s1 = inlined_call_operand.vmem [shape: f32[9,32], index: 1, kind: input, shape index: {}]   ;;  %s649_s2 = inlined_call_operand.vmem [shape: f32[1,32], index: 2, kind: input, shape index: {}]   ;;  %s650_s3 = inlined_call_operand.vmem [shape: f32[32,32], index: 3, kind: input, shape index: {}]   ;;  %s651_s4 = inlined_call_operand.vmem [shape: f32[1,32], index: 4, kind: input, shape index: {}]   ;;  %s652_s5 = inlined_call_operand.vmem [shape: f32[32,32], index: 5, kind: input, shape index: {}]   ;;  %s653_s6 = inlined_call_operand.vmem [shape: f32[1,32], index: 6, kind: input, shape index: {}]   ;;  %s654_s7 = inlined_call_operand.vmem [shape: f32[32,128], index: 7, kind: input, shape index: {}]   ;;  %s655_s8 = inlined_call_operand.vmem [shape: f32[1,128], index: 8, kind: input, shape index: {}]   ;;  %s656_s9 = inlined_call_operand.hbm [shape: f32[8,128], index: 9, kind: output, shape index: {}]  }
   0x1   :  { %v34_v0 = vld [vmem:[%s648_s1] sm:$0xff]  ;;  %v35_v1 = vld [vmem:[%s648_s1 + $0x8] sm:$0x1]  ;;  %465 = vmatprep.subr.bf16.mxu0 %v516_v2  ;;  %vm467_vm2 = vmpackc.low %vm47_vm0, %vm517_vm1  ;;  %469 = vmatprep.subr.bf16.mxu1 %v516_v2  ;;  %v519_v5 = vmov 0.0  }
   0x2   :  { %v466_v3 = vpack.c.bf16 %v35_v1, %v34_v0  ;;  %v124_v4 = vld [vmem:[%s650_s3] sm:$0xff]  ;;  %429 = vmatprep.mubr.msk.f32.mxu0 %vm518_vm3, %v519_v5  ;;  %v125_v6 = vld [vmem:[%s650_s3 + $0x8] sm:$0xff]  ;;  %440 = vmatprep.mubr.msk.f32.mxu1 %vm518_vm3, %v519_v5 }
   0x3   :  { %14 = vsyncpa [#allocation3], 0  ;;  %v33_v7 = vld [vmem:[%s647_s0] sm:$0xff]  ;;  %vm43_vm4 = vcmask 72704   ;;  %v470_v8 = vpack.c.bf16 %v125_v6, %v124_v4  ;;  %v126_v9 = vld [vmem:[%s650_s3 + $0x10] sm:$0xff]  ;;  %vm135_vm6 = vcmask 261120  }
   0x4   :  { %468 = vmatpush3.bf16.msk.msra.mxu0 %vm467_vm2, %v466_v3  ;;  %v127_v10 = vld [vmem:[%s650_s3 + $0x18] sm:$0xff]  ;;  %v212_v12 = vld [vmem:[%s652_s5] sm:$0xff]  ;;  %v213_v13 = vld [vmem:[%s652_s5 + $0x8] sm:$0xff]  ;;  %s520_s19 = smov [#allocation2]  }
   0x5   :  { %475 = vmatprep.subr.bf16.mxu0 %v516_v2  ;;  %471 = vmatpush3.bf16.msra.mxu1 %v470_v8  ;;  %v473_v11 = vpack.c.bf16 %v127_v10, %v126_v9  ;;  %v476_v14 = vpack.c.bf16 %v213_v13, %v212_v12  ;;  %v398_v15 = vld [vmem:[%s649_s2] ss:$0 sm:$0xff]  ;;  %v214_v21 = vld [vmem:[%s652_s5 + $0x10] sm:$0xff]  ;;  %v215_v22 = vld [vmem:[%s652_s5 + $0x18] sm:$0xff] }
   0x6   :  { %472 = vmatprep.subr.bf16.mxu1 %v516_v2  ;;  %v479_v23 = vpack.c.bf16 %v215_v22, %v214_v21  ;;  %v299_v24 = vld [vmem:[%s654_s7] sm:$0xff]  ;;  %v300_v25 = vld [vmem:[%s654_s7 + $0x8] sm:$0xff]  ;;  %v301_v33 = vld [vmem:[%s654_s7 + $0x10] sm:$0xff] }
   0x7   :  { %430 = vmatmul.mubr.msk.f32.vlgmr.msra.gmra.mrb[0].mxu0 %vm43_vm4, %v33_v7  ;;  %v482_v26 = vpack.c.bf16 %v300_v25, %v299_v24  ;;  %v401_v27 = vld [vmem:[%s651_s4] ss:$0 sm:$0xff]  ;;  %v302_v34 = vld [vmem:[%s654_s7 + $0x18] sm:$0xff]  ;;  %s390_s7 = sshll.u32 %s520_s19, 4  ;;  %s391_s7 = int_to_ptr.vmem [resolvable:$true] %s390_s7 }
   0x8   :  { %451 = vmatprep.mubr.msk.f32.mxu0 %vm518_vm3, %v519_v5  ;;  %477 = vmatpush3.bf16.msra.mxu0 %v476_v14  ;;  %v485_v35 = vpack.c.bf16 %v302_v34, %v301_v33  ;;  %v403_v36 = vld [vmem:[%s653_s6] ss:$0 sm:$0xff]  ;;  %s492_s6 = scalar_lea.vmem %s391_s7, 128  ;;  %p497_p1 = scmp.lt.s32.totalorder %s391_s7, %s391_s7 }
   0x9   :  { %474 = vmatpush3.bf16.msra.mxu1 %v473_v11  ;;  %478 = vmatprep.subr.bf16.mxu0 %v516_v2  ;;  %v405_v42 = vld [vmem:[%s655_s8] ss:$0 sm:$0xff]  ;;  %p493_p0 = scmp.ne.s32.totalorder %s391_s7, %s492_s6  ;;  %p498_p2 = scmp.lt.s32.totalorder %s492_s6, %s492_s6 }
   0xa   :  { %481 = vmatprep.subr.bf16.mxu1 %v516_v2 }
   0xb   :  { %p499_p3 = por %p498_p2, %p497_p1 }
   0xc   :  { %480 = vmatpush3.bf16.msra.mxu0 %v479_v23 }
   0xd   :  { %p500_p4 = pnand %p499_p3, %p493_p0 }
  0xda   :  { %v117_v16 = vpop.f32.mrb[0].mxu0 }
  0xdb   :  { %v118_v17 = vadd.f32 %v398_v15, %v117_v16  ;;  %v431_v18 = vpop.f32.mrb[1].mxu0 }
  0xdd   :  { %vm121_vm5 = vcmp.gt.f32.partialorder %v118_v17, 0.0  ;;  %v122_v19 = vmul.f32 0.01, %v118_v17 }
  0xdf   :  { %v123_v20 = vsel %vm121_vm5, %v118_v17, %v122_v19 }
  0xe0   :  { %441 = vmatmul.mubr.msk.f32.vlgmr.msra.gmra.mrb[0].mxu1 %vm135_vm6, %v123_v20 }
  0xe1   :  { %462 = vmatprep.mubr.msk.f32.mxu1 %vm518_vm3, %v519_v5  ;;  %483 = vmatpush3.bf16.msra.mxu1 %v482_v26 }
  0xe2   :  { %484 = vmatprep.subr.bf16.mxu1 %v516_v2 }
  0xe5   :  { %486 = vmatpush3.bf16.msra.mxu1 %v485_v35 }
 0x1b3   :  { %v205_v28 = vpop.f32.mrb[0].mxu1 }
 0x1b4   :  { %v206_v29 = vadd.f32 %v401_v27, %v205_v28  ;;  %v442_v30 = vpop.f32.mrb[1].mxu1 }
 0x1b6   :  { %vm209_vm7 = vcmp.gt.f32.partialorder %v206_v29, 0.0  ;;  %v210_v31 = vmul.f32 0.01, %v206_v29 }
 0x1b8   :  { %v211_v32 = vsel %vm209_vm7, %v206_v29, %v210_v31 }
 0x1b9   :  { %452 = vmatmul.mubr.msk.f32.vlgmr.msra.gmra.mrb[2].mxu0 %vm135_vm6, %v211_v32 }
 0x28c   :  { %v292_v37 = vpop.f32.mrb[2].mxu0 }
 0x28d   :  { %v293_v38 = vadd.f32 %v403_v36, %v292_v37  ;;  %v453_v39 = vpop.f32.mrb[3].mxu0 }
 0x28f   :  { %vm296_vm8 = vcmp.gt.f32.partialorder %v293_v38, 0.0  ;;  %v297_v40 = vmul.f32 0.01, %v293_v38 }
 0x291   :  { %v298_v41 = vsel %vm296_vm8, %v293_v38, %v297_v40 }
 0x292   :  { %463 = vmatmul.mubr.msk.f32.vlgmr.msra.gmra.mrb[2].mxu1 %vm135_vm6, %v298_v41 }
 0x365   :  { %v379_v43 = vpop.f32.mrb[2].mxu1 }
 0x366   :  { %v380_v44 = vadd.f32 %v405_v42, %v379_v43  ;;  %v464_v45 = vpop.f32.mrb[3].mxu1 }
 0x368   :  { %383 = vst [vmem:[#allocation2] sm:$0xff] %v380_v44 }
 0x369   :  { %503 = shalt.err (!%p500_p4)
}
 0x36a   :  { %s504_s0 = scalar_lea.hbm %s656_s9, 128 }
 0x36b   :  { %p505_p5 = scmp.ne.s32.totalorder %s656_s9, %s504_s0  ;;  %p508_p6 = scmp.lt.u32.totalorder %s504_s0, %s656_s9 }
 0x36d   :  { %p510_p7 = pnand %p508_p6, %p505_p5 }
 0x36f   :  { %513 = shalt.err (!%p510_p7)
}
 0x370   :  { %393 = dma.vmem_to_hbm [thread:$0]  %s391_s7, 128, %s656_s9, [#allocation3]  }
 0x371   :  { %514 = dma.done.wait [#allocation3], 128  }
 0x372   :  { %515 = vsyncadd [#allocation3], 4294967168 }
 0x373   :  { %397 = vsyncpa [#allocation3], 1 }

</bundles_post_ra>
